<compile_context>
chip_gen: v6e
topology: v6e:2x2x1
jax: 0.10.0
libtpu: 0.0.40
codegen_flags: <defaults>
</compile_context>

<pallas_src>
import jax
import jax.numpy as jnp
from jax import lax
from jax.experimental import pallas as pl
from jax.experimental.pallas import tpu as pltpu

SQRT5 = 2.2360679774997896


def _matern52_from_r2(r2):
    """Matern-5/2 kernel from squared distance (single sqrt + single exp)."""
    sr = SQRT5 * jnp.sqrt(r2)
    return (1.0 + sr + (5.0 / 3.0) * r2) * jnp.exp(-sr)


def _round_up(x, m):
    return ((x + m - 1) // m) * m


def _pick_tile(size, target, align):
    """Tile size + padded extent: whole array if small, else `target` tiles."""
    if size <= target:
        t = _round_up(size, align)
        return t, t
    return target, _round_up(size, target)


def gp_mean_kernel(xt_ref, sqt_ref, alpha_ref, xs_ref, sqs_ref, out_ref,
                   acc_ref):
    """One (i = test tile, j = train tile) step of exp(K(X*, Xtr) @ alpha).

    xt_ref   : [tm, D]  ARD-scaled train tile          (VMEM)
    sqt_ref  : [tm, 1]  squared row norms of xt        (VMEM)
    alpha_ref: [tm, 1]  outputscale * GP weights       (VMEM)
    xs_ref   : [tn, D]  ARD-scaled test tile           (VMEM)
    sqs_ref  : [1, tn]  squared row norms of xs        (VMEM, lane-dense)
    out_ref  : [1, tn]  exp(K @ alpha) (lane-dense)    (VMEM)
    acc_ref  : [1, tn]  f32 accumulator over the M axis (scratch)
    """
    j = pl.program_id(1)

    @pl.when(j == 0)
    def _init():
        acc_ref[...] = jnp.zeros_like(acc_ref)

    # Cross term on the MXU, contracting the (small) feature axis of both
    # operands directly -- no materialized transpose of either tile.
    cross = lax.dot_general(
        xt_ref[...], xs_ref[...],
        dimension_numbers=(((1,), (1,)), ((), ())),
        preferred_element_type=jnp.float32)                      # [tm, tn]

    # Squared distances + Matern-5/2: exactly two EUP ops (sqrt, exp) per
    # element, the rest is VPU polynomial work.
    r2 = jnp.maximum(sqt_ref[...] + sqs_ref[...] - 2.0 * cross, 0.0)
    sr = SQRT5 * jnp.sqrt(r2)
    k = (1.0 + sr + (5.0 / 3.0) * r2) * jnp.exp(-sr)             # [tm, tn]

    # K^T @ alpha as VPU multiply + sublane reduction into the lane-dense
    # accumulator (an [N,M]@[M,1] MXU mat-vec would waste 255/256 columns).
    # outputscale is pre-folded into alpha; padded rows have alpha == 0.
    acc_ref[...] += jnp.sum(k * alpha_ref[...], axis=0, keepdims=True)

    @pl.when(j == pl.num_programs(1) - 1)
    def _finalize():
        # mean_const is folded in as a post-exp scale in the wrapper.
        out_ref[...] = jnp.exp(acc_ref[...])


def cost_model_gp_forward(x_test, params, *, tn_target=256, tm_target=1024):
    """exp(GP posterior mean) -- the CostModelGP.forward hot path.

    `params` holds the inference-time constants hoisted out of the kernel:
      inv_ls         [1, D]  reciprocal ARD lengthscales
      xt_scaled      [M, D]  x_train * inv_ls
      sq_t           [M, 1]  squared row norms of xt_scaled
      alpha_scaled   [M, 1]  outputscale * (K + noise I)^-1 (log y - mean)
      exp_mean_const []      exp(constant mean)
    """
    n, d = x_test.shape
    xt = params["xt_scaled"]
    m = xt.shape[0]

    # Per-call test-side prep: cheap XLA glue, produces a lane-dense [1, N].
    xs = (x_test * params["inv_ls"]).astype(jnp.float32)
    sq_s = jnp.sum(xs * xs, axis=-1)[None, :]

    tn, n_pad = _pick_tile(n, tn_target, 128)   # lane-dense output tiles
    tm, m_pad = _pick_tile(m, tm_target, 8)

    xs_p = jnp.pad(xs, ((0, n_pad - n), (0, 0)))
    sqs_p = jnp.pad(sq_s, ((0, 0), (0, n_pad - n)))
    xt_p = jnp.pad(xt, ((0, m_pad - m), (0, 0)))
    sqt_p = jnp.pad(params["sq_t"], ((0, m_pad - m), (0, 0)))
    al_p = jnp.pad(params["alpha_scaled"], ((0, m_pad - m), (0, 0)))

    out = pl.pallas_call(
        gp_mean_kernel,
        out_shape=jax.ShapeDtypeStruct((1, n_pad), jnp.float32),
        grid_spec=pltpu.PrefetchScalarGridSpec(
            num_scalar_prefetch=0,
            grid=(n_pad // tn, m_pad // tm),      # reduction (M) axis last
            in_specs=[
                pl.BlockSpec((tm, d), lambda i, j: (j, 0)),   # x_train tile
                pl.BlockSpec((tm, 1), lambda i, j: (j, 0)),   # sq_t tile
                pl.BlockSpec((tm, 1), lambda i, j: (j, 0)),   # alpha tile
                pl.BlockSpec((tn, d), lambda i, j: (i, 0)),   # x_test tile
                pl.BlockSpec((1, tn), lambda i, j: (0, i)),   # sq_s tile
            ],
            out_specs=pl.BlockSpec((1, tn), lambda i, j: (0, i)),
            scratch_shapes=[pltpu.VMEM((1, tn), jnp.float32)],
        ),
        compiler_params=pltpu.CompilerParams(
            dimension_semantics=("parallel", "arbitrary"),
            vmem_limit_bytes=32 * 1024 * 1024,
        ),
    )(xt_p, sqt_p, al_p, xs_p, sqs_p)

    # Fold the constant mean in as a post-exp scale (one tiny XLA op).
    return params["exp_mean_const"] * out[0, :n]


def _matern52_gram(x, inv_ls):
    """Plain-JAX Matern-5/2 Gram matrix (training-time glue for alpha)."""
    xs = x * inv_ls
    sq = jnp.sum(xs * xs, axis=-1, keepdims=True)
    r2 = jnp.maximum(sq + sq.T - 2.0 * (xs @ xs.T), 0.0)
    return _matern52_from_r2(r2)


def build_gp_params(x_train, y_cost):
    """Deterministic synthetic 'fitted' GP hyperparameters + hoisted constants."""
    m, d = x_train.shape
    # Synthetic hyperparameters (stand-ins for fit_gpytorch_mll results).
    lengthscales = 0.5 + 0.1 * jnp.arange(d, dtype=jnp.float32)   # ARD, [D]
    outputscale = jnp.float32(1.3)
    noise = jnp.float32(1e-2)

    y_log = jnp.log(y_cost)                     # Log outcome transform
    mean_const = jnp.mean(y_log)                # constant mean module

    inv_ls = (1.0 / lengthscales)[None, :].astype(jnp.float32)    # [1, D]
    k_train = outputscale * _matern52_gram(x_train, inv_ls)
    k_train = k_train + noise * jnp.eye(m, dtype=jnp.float32)

    # alpha = (K + noise I)^{-1} (y_log - mean_const)  -- fixed at inference.
    chol = jnp.linalg.cholesky(k_train)
    resid = (y_log - mean_const)[:, None]
    alpha = jax.scipy.linalg.cho_solve((chol, True), resid)       # [M, 1]

    # Inference-time constants hoisted ONCE (never recomputed in the kernel).
    xt_scaled = (x_train * inv_ls).astype(jnp.float32)
    sq_t = jnp.sum(xt_scaled * xt_scaled, axis=-1, keepdims=True)

    return dict(
        inv_ls=inv_ls,
        xt_scaled=xt_scaled,
        sq_t=sq_t.astype(jnp.float32),
        alpha_scaled=(outputscale * alpha).astype(jnp.float32),
        exp_mean_const=jnp.exp(mean_const).astype(jnp.float32),
        # raw pieces kept only for the reference check below
        alpha=alpha.astype(jnp.float32),
        outputscale=outputscale,
        mean_const=mean_const,
    )


if __name__ == "__main__":
    key = jax.random.PRNGKey(0)
    k1, k2, k3, k4, k5, k6, k7 = jax.random.split(key, 7)

    # ---- Test 1: end-to-end CostModelGP at module-typical small sizes ----
    D, M, N = 4, 16, 8
    x_train = jax.random.uniform(k1, (M, D), dtype=jnp.float32)
    y_cost = 0.5 + 2.0 * jax.random.uniform(k2, (M,), dtype=jnp.float32)
    x_test = jax.random.uniform(k3, (N, D), dtype=jnp.float32)

    params = build_gp_params(x_train, y_cost)
    pred = cost_model_gp_forward(x_test, params)
    jax.block_until_ready(pred)

    assert pred.shape == (N,)
    assert bool(jnp.all(pred > 0.0)) and bool(jnp.all(jnp.isfinite(pred)))

    # Plain-JAX reference of the same math.
    xs = x_test * params["inv_ls"]
    xt = x_train * params["inv_ls"]
    r2 = jnp.maximum(
        jnp.sum(xs * xs, -1, keepdims=True)
        + jnp.sum(xt * xt, -1, keepdims=True).T - 2.0 * (xs @ xt.T), 0.0)
    k_cross = params["outputscale"] * _matern52_from_r2(r2)
    ref = jnp.exp((k_cross @ params["alpha"])[:, 0] + params["mean_const"])
    assert bool(jnp.allclose(pred, ref, rtol=1e-4, atol=1e-5))

    # ---- Test 2: larger shapes exercising the (N parallel, M arbitrary) tiling ----
    D2, M2, N2 = 8, 700, 300
    x_train2 = jax.random.uniform(k4, (M2, D2), dtype=jnp.float32)
    x_test2 = jax.random.uniform(k5, (N2, D2), dtype=jnp.float32)
    inv_ls2 = 0.8 + jax.random.uniform(k6, (1, D2), dtype=jnp.float32)
    alpha2 = jax.random.normal(k7, (M2, 1), dtype=jnp.float32) / jnp.sqrt(M2)
    outputscale2 = jnp.float32(0.9)
    mean_const2 = jnp.float32(0.3)

    xt2 = (x_train2 * inv_ls2).astype(jnp.float32)
    params2 = dict(
        inv_ls=inv_ls2,
        xt_scaled=xt2,
        sq_t=jnp.sum(xt2 * xt2, axis=-1, keepdims=True),
        alpha_scaled=(outputscale2 * alpha2).astype(jnp.float32),
        exp_mean_const=jnp.exp(mean_const2).astype(jnp.float32),
    )
    pred2 = cost_model_gp_forward(x_test2, params2,
                                  tn_target=128, tm_target=256)
    jax.block_until_ready(pred2)

    xs2 = x_test2 * inv_ls2
    r2b = jnp.maximum(
        jnp.sum(xs2 * xs2, -1, keepdims=True)
        + jnp.sum(xt2 * xt2, -1, keepdims=True).T - 2.0 * (xs2 @ xt2.T), 0.0)
    ref2 = jnp.exp(outputscale2 * (_matern52_from_r2(r2b) @ alpha2)[:, 0]
                   + mean_const2)
    assert pred2.shape == (N2,)
    assert bool(jnp.all(jnp.isfinite(pred2)))
    assert bool(jnp.allclose(pred2, ref2, rtol=1e-3, atol=1e-5))

    print("KERNEL_OK")
</pallas_src>

<mosaic_0001>
module attributes {stable_mosaic.version = 11 : i64} {
  func.func @gp_mean_kernel(%arg0: i32, %arg1: i32, %arg2: memref<16x4xf32, #tpu.memory_space<vmem>>, %arg3: memref<16x1xf32, #tpu.memory_space<vmem>>, %arg4: memref<16x1xf32, #tpu.memory_space<vmem>>, %arg5: memref<128x4xf32, #tpu.memory_space<vmem>>, %arg6: memref<1x128xf32, #tpu.memory_space<vmem>>, %arg7: memref<1x128xf32, #tpu.memory_space<vmem>>, %arg8: memref<1x128xf32, #tpu.memory_space<vmem>>) attributes {dimension_semantics = [#tpu.dimension_semantics<parallel>, #tpu.dimension_semantics<arbitrary>], iteration_bounds = array<i64: 1, 1>, scalar_prefetch = 0 : i64, scratch_operands = 1 : i64, tpu.core_type = #tpu.core_type<tc>, window_params = [{transform_indices = @transform_0, window_bounds = array<i64: 16, 4>}, {transform_indices = @transform_1, window_bounds = array<i64: 16, 1>}, {transform_indices = @transform_2, window_bounds = array<i64: 16, 1>}, {transform_indices = @transform_3, window_bounds = array<i64: 128, 4>}, {transform_indices = @transform_4, window_bounds = array<i64: 1, 128>}, {transform_indices = @transform_5, window_bounds = array<i64: 1, 128>}]} {
    %c0_i32 = arith.constant 0 : i32
    %0 = arith.cmpi eq, %arg1, %c0_i32 : i32
    %1 = arith.extui %0 : i1 to i32
    %c0_i32_0 = arith.constant 0 : i32
    %2 = arith.cmpi ne, %1, %c0_i32_0 : i32
    scf.if %2 {
      %cst_23 = arith.constant 0.000000e+00 : f32
      %39 = vector.broadcast %cst_23 : f32 to vector<1x128xf32>
      %c0_24 = arith.constant 0 : index
      %c0_25 = arith.constant 0 : index
      %40 = vector.load %arg8[%c0_24, %c0_25] : memref<1x128xf32, #tpu.memory_space<vmem>>, vector<1x128xf32>
      tpu.vector_store %arg8[%c0_24, %c0_25], %39 {strides = array<i32>} : memref<1x128xf32, #tpu.memory_space<vmem>>, vector<1x128xf32>,
    } else {
    }
    %c0 = arith.constant 0 : index
    %c0_1 = arith.constant 0 : index
    %3 = vector.load %arg2[%c0, %c0_1] : memref<16x4xf32, #tpu.memory_space<vmem>>, vector<16x4xf32>
    %c0_2 = arith.constant 0 : index
    %c0_3 = arith.constant 0 : index
    %4 = vector.load %arg5[%c0_2, %c0_3] : memref<128x4xf32, #tpu.memory_space<vmem>>, vector<128x4xf32>
    %cst = arith.constant dense<0.000000e+00> : vector<16x128xf32>
    %5 = tpu.matmul %3, %4, %cst {dimension_numbers = #tpu.dot_dimension_numbers<[1], [1], [0], [0], [0, 0, 1, 0], [], []>} : vector<16x4xf32>, vector<128x4xf32>, vector<16x128xf32> -> vector<16x128xf32>
    %c0_4 = arith.constant 0 : index
    %c0_5 = arith.constant 0 : index
    %6 = vector.load %arg3[%c0_4, %c0_5] : memref<16x1xf32, #tpu.memory_space<vmem>>, vector<16x1xf32>
    %c0_6 = arith.constant 0 : index
    %c0_7 = arith.constant 0 : index
    %7 = vector.load %arg6[%c0_6, %c0_7] : memref<1x128xf32, #tpu.memory_space<vmem>>, vector<1x128xf32>
    %8 = vector.broadcast %6 : vector<16x1xf32> to vector<16x128xf32>
    %9 = vector.broadcast %7 : vector<1x128xf32> to vector<16x128xf32>
    %10 = arith.addf %8, %9 : vector<16x128xf32>
    %cst_8 = arith.constant 2.000000e+00 : f32
    %11 = vector.broadcast %cst_8 : f32 to vector<16x128xf32>
    %12 = arith.mulf %11, %5 : vector<16x128xf32>
    %13 = arith.subf %10, %12 : vector<16x128xf32>
    %cst_9 = arith.constant 0.000000e+00 : f32
    %14 = vector.broadcast %cst_9 : f32 to vector<16x128xf32>
    %15 = arith.maximumf %13, %14 : vector<16x128xf32>
    %16 = math.sqrt %15 : vector<16x128xf32>
    %cst_10 = arith.constant 2.23606801 : f32
    %17 = vector.broadcast %cst_10 : f32 to vector<16x128xf32>
    %18 = arith.mulf %17, %16 : vector<16x128xf32>
    %cst_11 = arith.constant 1.000000e+00 : f32
    %19 = vector.broadcast %cst_11 : f32 to vector<16x128xf32>
    %20 = arith.addf %19, %18 : vector<16x128xf32>
    %cst_12 = arith.constant 1.66666663 : f32
    %21 = vector.broadcast %cst_12 : f32 to vector<16x128xf32>
    %22 = arith.mulf %21, %15 : vector<16x128xf32>
    %23 = arith.addf %20, %22 : vector<16x128xf32>
    %cst_13 = arith.constant 0.000000e+00 : f32
    %24 = vector.broadcast %cst_13 : f32 to vector<16x128xf32>
    %25 = arith.subf %24, %18 : vector<16x128xf32>
    %26 = math.exp %25 : vector<16x128xf32>
    %27 = arith.mulf %23, %26 : vector<16x128xf32>
    %c0_14 = arith.constant 0 : index
    %c0_15 = arith.constant 0 : index
    %28 = vector.load %arg8[%c0_14, %c0_15] : memref<1x128xf32, #tpu.memory_space<vmem>>, vector<1x128xf32>
    %c0_16 = arith.constant 0 : index
    %c0_17 = arith.constant 0 : index
    %29 = vector.load %arg4[%c0_16, %c0_17] : memref<16x1xf32, #tpu.memory_space<vmem>>, vector<16x1xf32>
    %30 = vector.broadcast %29 : vector<16x1xf32> to vector<16x128xf32>
    %31 = arith.mulf %27, %30 : vector<16x128xf32>
    %cst_18 = arith.constant dense<0.000000e+00> : vector<128xf32>
    %32 = vector.multi_reduction <add>, %31, %cst_18 [0] : vector<16x128xf32> to vector<128xf32>
    %33 = vector.shape_cast %32 : vector<128xf32> to vector<1x128xf32>
    %34 = arith.addf %28, %33 : vector<1x128xf32>
    %c0_19 = arith.constant 0 : index
    %c0_20 = arith.constant 0 : index
    %35 = vector.load %arg8[%c0_19, %c0_20] : memref<1x128xf32, #tpu.memory_space<vmem>>, vector<1x128xf32>
    tpu.vector_store %arg8[%c0_19, %c0_20], %34 {strides = array<i32>} : memref<1x128xf32, #tpu.memory_space<vmem>>, vector<1x128xf32>,
    %c0_i32_21 = arith.constant 0 : i32
    %36 = arith.cmpi eq, %arg1, %c0_i32_21 : i32
    %37 = arith.extui %36 : i1 to i32
    %c0_i32_22 = arith.constant 0 : i32
    %38 = arith.cmpi ne, %37, %c0_i32_22 : i32
    scf.if %38 {
      %c0_23 = arith.constant 0 : index
      %c0_24 = arith.constant 0 : index
      %39 = vector.load %arg8[%c0_23, %c0_24] : memref<1x128xf32, #tpu.memory_space<vmem>>, vector<1x128xf32>
      %40 = math.exp %39 : vector<1x128xf32>
      %c0_25 = arith.constant 0 : index
      %c0_26 = arith.constant 0 : index
      %41 = vector.load %arg7[%c0_25, %c0_26] : memref<1x128xf32, #tpu.memory_space<vmem>>, vector<1x128xf32>
      tpu.vector_store %arg7[%c0_25, %c0_26], %40 {strides = array<i32>} : memref<1x128xf32, #tpu.memory_space<vmem>>, vector<1x128xf32>,
    } else {
    }
    return
  }
  func.func @transform_0(%arg0: i32, %arg1: i32) -> (i32, i32) {
    %c0_i32 = arith.constant 0 : i32
    %c0_i32_0 = arith.constant 0 : i32
    return %arg1, %c0_i32 : i32, i32
  }
  func.func @transform_1(%arg0: i32, %arg1: i32) -> (i32, i32) {
    %c0_i32 = arith.constant 0 : i32
    %c0_i32_0 = arith.constant 0 : i32
    return %arg1, %c0_i32 : i32, i32
  }
  func.func @transform_2(%arg0: i32, %arg1: i32) -> (i32, i32) {
    %c0_i32 = arith.constant 0 : i32
    %c0_i32_0 = arith.constant 0 : i32
    return %arg1, %c0_i32 : i32, i32
  }
  func.func @transform_3(%arg0: i32, %arg1: i32) -> (i32, i32) {
    %c0_i32 = arith.constant 0 : i32
    %c0_i32_0 = arith.constant 0 : i32
    return %arg0, %c0_i32 : i32, i32
  }
  func.func @transform_4(%arg0: i32, %arg1: i32) -> (i32, i32) {
    %c0_i32 = arith.constant 0 : i32
    %c0_i32_0 = arith.constant 0 : i32
    return %c0_i32, %arg0 : i32, i32
  }
  func.func @transform_5(%arg0: i32, %arg1: i32) -> (i32, i32) {
    %c0_i32 = arith.constant 0 : i32
    %c0_i32_0 = arith.constant 0 : i32
    return %c0_i32, %arg0 : i32, i32
  }
}

</mosaic_0001>

<bundles_post_ra>
// kernel: tpu_custom_call.1
= control target key start
LH: loop header
LB: loop body
LE: loop exit
PB: predicated region body
PF: predicated region fallthrough
CT: control target
= control target key end

     0   :  { %vm44_vm0 = vcmask 31744   ;;  %v385_v2 = vmov 0   ;;  %s524_s0 = inlined_call_operand.vmem [shape: f32[16,4], index: 0, kind: input, shape index: {}]   ;;  %s525_s1 = inlined_call_operand.vmem [shape: f32[16,1], index: 1, kind: input, shape index: {}]   ;;  %s526_s2 = inlined_call_operand.vmem [shape: f32[16,1], index: 2, kind: input, shape index: {}]   ;;  %s527_s3 = inlined_call_operand.vmem [shape: f32[128,4], index: 3, kind: input, shape index: {}]   ;;  %s528_s4 = inlined_call_operand.vmem [shape: f32[1,128], index: 4, kind: input, shape index: {}]   ;;  %s529_s5 = inlined_call_operand.hbm [shape: f32[1,128], index: 5, kind: output, shape index: {}]  }
   0x1   :  { %v43_v0 = vld [vmem:[%s527_s3 + $0x78] sm:$0xff]  ;;  %v42_v1 = vld [vmem:[%s527_s3 + $0x70] sm:$0xff]  ;;  %351 = vset.pattern.permute.xlu0 %v385_v2  ;;  %352 = vset.pattern.permute.xlu1 %v385_v2  ;;  %v41_v3 = vld [vmem:[%s527_s3 + $0x68] sm:$0xff] }
   0x2   :  { %313 = vmatprep.subr.msk.mxu0 %vm44_vm0, %v43_v0  ;;  %v26_v4 = vld [vmem:[%s524_s0] sm:$0xff] }
   0x3   :  { %314 = vmatpush3.xpose.msk.msra.mxu0 %vm44_vm0, %v43_v0  ;;  %345 = vmatprep.mubr.msk.f32.mxu0 %vm44_vm0, %v26_v4  ;;  %v174_v5 = vld [vmem:[%s525_s1] sm:$0xff] }
   0x4   :  { %315 = vmatprep.subr.msk.mxu0 %vm44_vm0, %v42_v1  ;;  %v232_v6 = vld [vmem:[%s526_s2] sm:$0xff]  ;;  %179 = vperm.xlu0 %351, %v174_v5  }
   0x7   :  { %316 = vmatpush3.xpose.msk.msra.mxu0 %vm44_vm0, %v42_v1 }
   0x8   :  { %317 = vmatprep.subr.msk.mxu0 %vm44_vm0, %v41_v3 }
   0x9   :  { %10 = vsyncpa [#allocation4], 0  ;;  %v40_v7 = vld [vmem:[%s527_s3 + $0x60] sm:$0xff]  ;;  %v175_v8 = vld [vmem:[%s525_s1 + $0x8] sm:$0xff]  ;;  %236 = vperm.xlu1 %352, %v232_v6   ;;  %v386_v23 = vmov 0.0  }
   0xa   :  { %v233_v9 = vld [vmem:[%s526_s2 + $0x8] sm:$0xff]  ;;  %184 = vperm.xlu0 %351, %v175_v8   ;;  %v39_v10 = vld [vmem:[%s527_s3 + $0x58] sm:$0xff]  ;;  %v38_v11 = vld [vmem:[%s527_s3 + $0x50] sm:$0xff]  ;;  %25 = vst [vmem:[#allocation2] sm:$0x1] %v386_v23 }
   0xb   :  { %318 = vmatpush3.xpose.msk.msra.mxu0 %vm44_vm0, %v41_v3  ;;  %v37_v12 = vld [vmem:[%s527_s3 + $0x48] sm:$0xff]  ;;  %v36_v13 = vld [vmem:[%s527_s3 + $0x40] sm:$0xff]  ;;  %v35_v14 = vld [vmem:[%s527_s3 + $0x38] sm:$0xff] }
   0xc   :  { %319 = vmatprep.subr.msk.mxu0 %vm44_vm0, %v40_v7  ;;  %v34_v15 = vld [vmem:[%s527_s3 + $0x30] sm:$0xff]  ;;  %v33_v16 = vld [vmem:[%s527_s3 + $0x28] sm:$0xff]  ;;  %v32_v17 = vld [vmem:[%s527_s3 + $0x20] sm:$0xff] }
   0xd   :  { %241 = vperm.xlu1 %352, %v233_v9   ;;  %v31_v18 = vld [vmem:[%s527_s3 + $0x18] sm:$0xff]  ;;  %v30_v19 = vld [vmem:[%s527_s3 + $0x10] sm:$0xff]  ;;  %v29_v20 = vld [vmem:[%s527_s3 + $0x8] sm:$0xff] }
   0xe   :  { %v28_v21 = vld [vmem:[%s527_s3] sm:$0xff]  ;;  %v27_v22 = vld [vmem:[%s524_s0 + $0x8] sm:$0xff]  ;;  %s387_s0 = smov [#allocation3]  }
   0xf   :  { %320 = vmatpush3.xpose.msk.msra.mxu0 %vm44_vm0, %v40_v7  ;;  %v294_v25 = vld [vmem:[%s528_s4] ss:$0 sm:$0xff]  ;;  %s268_s3 = sshll.u32 %s387_s0, 4  ;;  %s269_s3 = int_to_ptr.vmem [resolvable:$true] %s268_s3 }
  0x10   :  { %321 = vmatprep.subr.msk.mxu0 %vm44_vm0, %v39_v10  ;;  %s363_s4 = scalar_lea.vmem %s269_s3, 16  ;;  %s367_s12 = scalar_lea.vmem %s269_s3, 32 }
  0x11   :  { %v231_v9 = vld [vmem:[#allocation2] sm:$0x1]  ;;  %p364_p0 = scmp.ne.s32.totalorder %s269_s3, %s363_s4  ;;  %p368_p1 = scmp.lt.s32.totalorder %s269_s3, %s269_s3 }
  0x12   :  { %p369_p2 = scmp.lt.s32.totalorder %s367_s12, %s363_s4 }
  0x13   :  { %322 = vmatpush3.xpose.msk.msra.mxu0 %vm44_vm0, %v39_v10 }
  0x14   :  { %323 = vmatprep.subr.msk.mxu0 %vm44_vm0, %v38_v11  ;;  %p370_p3 = por %p369_p2, %p368_p1 }
  0x16   :  { %p371_p4 = pnand %p370_p3, %p364_p0 }
  0x17   :  { %324 = vmatpush3.xpose.msk.msra.mxu0 %vm44_vm0, %v38_v11 }
  0x18   :  { %325 = vmatprep.subr.msk.mxu0 %vm44_vm0, %v37_v12 }
  0x1b   :  { %326 = vmatpush3.xpose.msk.msra.mxu0 %vm44_vm0, %v37_v12 }
  0x1c   :  { %327 = vmatprep.subr.msk.mxu0 %vm44_vm0, %v36_v13 }
  0x1f   :  { %328 = vmatpush3.xpose.msk.msra.mxu0 %vm44_vm0, %v36_v13 }
  0x20   :  { %329 = vmatprep.subr.msk.mxu0 %vm44_vm0, %v35_v14 }
  0x23   :  { %330 = vmatpush3.xpose.msk.msra.mxu0 %vm44_vm0, %v35_v14 }
  0x24   :  { %331 = vmatprep.subr.msk.mxu0 %vm44_vm0, %v34_v15 }
  0x27   :  { %332 = vmatpush3.xpose.msk.msra.mxu0 %vm44_vm0, %v34_v15 }
  0x28   :  { %333 = vmatprep.subr.msk.mxu0 %vm44_vm0, %v33_v16 }
  0x2b   :  { %334 = vmatpush3.xpose.msk.msra.mxu0 %vm44_vm0, %v33_v16 }
  0x2c   :  { %335 = vmatprep.subr.msk.mxu0 %vm44_vm0, %v32_v17 }
  0x2f   :  { %336 = vmatpush3.xpose.msk.msra.mxu0 %vm44_vm0, %v32_v17 }
  0x30   :  { %337 = vmatprep.subr.msk.mxu0 %vm44_vm0, %v31_v18 }
  0x33   :  { %338 = vmatpush3.xpose.msk.msra.mxu0 %vm44_vm0, %v31_v18 }
  0x34   :  { %339 = vmatprep.subr.msk.mxu0 %vm44_vm0, %v30_v19 }
  0x37   :  { %340 = vmatpush3.xpose.msk.msra.mxu0 %vm44_vm0, %v30_v19 }
  0x38   :  { %341 = vmatprep.subr.msk.mxu0 %vm44_vm0, %v29_v20 }
  0x3b   :  { %342 = vmatpush3.xpose.msk.msra.mxu0 %vm44_vm0, %v29_v20 }
  0x3c   :  { %343 = vmatprep.subr.msk.mxu0 %vm44_vm0, %v28_v21 }
  0x3f   :  { %344 = vmatpush3.xpose.msk.msra.mxu0 %vm44_vm0, %v28_v21 }
  0x42   :  { %346 = vmatmul.mubr.msk.f32.vlgmr.msra.gmra.mxu0 %vm44_vm0, %v27_v22 }
  0x7f   :  { %v180_v24 = vpop.permute.xlu0 %179 }
  0x80   :  { %v193_v31 = vadd.f32 %v294_v25, %v180_v24 }
  0x84   :  { %v237_v56 = vpop.permute.xlu1 %236 }
  0x85   :  { %v185_v26 = vpop.permute.xlu0 %184 }
  0x86   :  { %v194_v28 = vadd.f32 %v294_v25, %v185_v26 }
  0x88   :  { %v242_v0 = vpop.permute.xlu1 %241 }
 0x102   :  { %v347_v27 = vpop.f32.mrf.mxu0 }
 0x103   :  { %v196_v29 = vmul.f32 2.0, %v347_v27 }
 0x104   :  { %v165_v30 = vpop.f32.mrf.mxu0 }
 0x105   :  { %v198_v32 = vsub.f32 %v194_v28, %v196_v29  ;;  %v195_v33 = vmul.f32 2.0, %v165_v30 }
 0x107   :  { %v200_v34 = vmax.f32 %v198_v32, 0.0  ;;  %v197_v35 = vsub.f32 %v193_v31, %v195_v33 }
 0x109   :  { %353 = vrsqrt.f32 %v200_v34  ;;  %v199_v36 = vmax.f32 %v197_v35, 0.0  ;;  %vm210_vm1 = vcmp.eq.f32.partialorder %v200_v34, inf  ;;  %v213_v40 = vand.u32 2147483648, %v200_v34 }
 0x10a   :  { %vm212_vm2 = vcmp.eq.f32.partialorder %v200_v34, 0.0  ;;  %v220_v55 = vmul.f32 1.6666666, %v200_v34 }
 0x10b   :  { %355 = vrsqrt.f32 %v199_v36  ;;  %vm203_vm3 = vcmp.eq.f32.partialorder %v199_v36, inf  ;;  %v206_v43 = vand.u32 2147483648, %v199_v36  ;;  %vm205_vm4 = vcmp.eq.f32.partialorder %v199_v36, 0.0 }
 0x10c   :  { %v219_v57 = vmul.f32 1.6666666, %v199_v36 }
 0x116   :  { %v354_v37 = vpop.eup %353 }
 0x117   :  { %v209_v38 = vmul.f32 %v354_v37, %v200_v34 }
 0x118   :  { %v356_v39 = vpop.eup %355 }
 0x119   :  { %v202_v41 = vmul.f32 %v356_v39, %v199_v36  ;;  %v211_v42 = vsel %vm210_vm1, %v200_v34, %v209_v38 }
 0x11a   :  { %v214_v44 = vsel %vm212_vm2, %v213_v40, %v211_v42 }
 0x11b   :  { %v204_v45 = vsel %vm203_vm3, %v199_v36, %v202_v41  ;;  %v216_v46 = vmul.f32 2.236068, %v214_v44 }
 0x11c   :  { %v207_v47 = vsel %vm205_vm4, %v206_v43, %v204_v45 }
 0x11d   :  { %v215_v48 = vmul.f32 2.236068, %v207_v47  ;;  %v224_v49 = vsub.f32 0.0, %v216_v46  ;;  %v218_v53 = vadd.f32 1.0, %v216_v46 }
 0x11f   :  { %v223_v50 = vsub.f32 0.0, %v215_v48  ;;  %v227_v51 = vmul.f32 1.442695, %v224_v49  ;;  %v217_v54 = vadd.f32 1.0, %v215_v48  ;;  %v222_v58 = vadd.f32 %v220_v55, %v218_v53 }
 0x121   :  { %v225_v52 = vmul.f32 1.442695, %v223_v50  ;;  %357 = vpow2.f32 %v227_v51  ;;  %v221_v60 = vadd.f32 %v219_v57, %v217_v54 }
 0x123   :  { %359 = vpow2.f32 %v225_v52 }
 0x12e   :  { %v358_v59 = vpop.eup %357 }
 0x12f   :  { %v230_v61 = vmul.f32 %v358_v59, %v222_v58 }
 0x130   :  { %v360_v62 = vpop.eup %359 }
 0x131   :  { %v229_v63 = vmul.f32 %v360_v62, %v221_v60  ;;  %v245_v2 = vmul.f32 %v242_v0, %v230_v61 }
 0x133   :  { %v244_v1 = vmul.f32 %v237_v56, %v229_v63 }
 0x135   :  { %v246_v3 = vadd.f32 %v245_v2, %v244_v1 }
 0x137   :  { %v247_v4 = vrot.slane %v246_v3, 4 }
 0x139   :  { %v248_v5 = vadd.f32 %v247_v4, %v246_v3 }
 0x13b   :  { %v249_v6 = vrot.slane %v248_v5, 2 }
 0x13d   :  { %v250_v7 = vadd.f32 %v249_v6, %v248_v5 }
 0x13f   :  { %v251_v8 = vrot.slane %v250_v7, 1 }
 0x141   :  { %v252_v10 = vadd.f32 %v251_v8, %v250_v7 }
 0x143   :  { %v253_v11 = vadd.f32 %v252_v10, %v231_v9 }
 0x145   :  { %254 = vst [vmem:[#allocation2] sm:$0x1] %v253_v11 }
 0x14c   :  { %v258_v12 = vld [vmem:[#allocation2] sm:$0x1] }
 0x14d   :  { %v259_v13 = vmul.f32 1.442695, %v258_v12 }
 0x14f   :  { %361 = vpow2.f32 %v259_v13 }
 0x15c   :  { %v362_v14 = vpop.eup %361 }
 0x15d   :  { %261 = vst [vmem:[#allocation3] sm:$0x1] %v362_v14 }
 0x15e   :  { %374 = shalt.err (!%p371_p4)
}
 0x15f   :  { %271 = dma.vmem_to_hbm [thread:$0]  %s269_s3, 16, %s529_s5, [#allocation4]  }
 0x160   :  { %383 = dma.done.wait [#allocation4], 16  }
 0x161   :  { %384 = vsyncadd [#allocation4], 4294967280 }
 0x162   :  { %275 = vsyncpa [#allocation4], 1 }

</bundles_post_ra>
